<compile_context>
chip_gen: v6e
topology: v6e:2x2x1
jax: 0.10.0
libtpu: 0.0.40
codegen_flags: <defaults>
</compile_context>

<pallas_src>
import jax
import jax.numpy as jnp
from jax.experimental import pallas as pl
from jax.experimental.pallas import tpu as pltpu

NEG_SLOPE = 0.01  # nn.LeakyReLU default negative_slope


def _round_up(x, m):
    return ((x + m - 1) // m) * m


def _cdiv(a, b):
    return -(-a // b)


def _vmem_capacity_bytes():
    """Per-core VMEM capacity; conservative (v7x = 64 MiB) if query unavailable."""
    try:
        info = pltpu.get_tpu_info()
        cap = getattr(info, "vmem_capacity_bytes", None)
        if cap:
            return int(cap)
    except Exception:
        pass
    return 64 << 20


def linear_block_kernel(x_ref, w_ref, b_ref, o_ref):
    # x_ref: (block_b, n_input) bf16   w_ref: (n_input, block_n) bf16
    # b_ref: (1, block_n) f32          o_ref: (block_b, block_n) f32
    y = jnp.dot(x_ref[...], w_ref[...], preferred_element_type=jnp.float32)
    y = y + b_ref[...]                     # bias broadcast over rows (f32)
    y = jnp.maximum(y, NEG_SLOPE * y)      # LeakyReLU (valid since 0 < slope < 1)
    # Dropout (eval/inference mode) == identity.
    o_ref[...] = y.astype(o_ref.dtype)


def prepare_linear_block_params(w, b, *, max_block_n=512):
    """One-time parameter prep, hoisted out of the per-call path.

    w: [n_input, n_output] f32 (PyTorch nn.Linear weight pre-transposed)
    b: [n_output] f32
    Returns (w_bf16 padded, bias_f32 padded [1, n_out_p], n_output, block_n).
    """
    n_input, n_output = w.shape
    block_n = min(_round_up(n_output, 128), max_block_n)   # lane-dense N tile
    n_out_p = _round_up(n_output, block_n)
    if n_out_p != n_output:
        w = jnp.pad(w, ((0, 0), (0, n_out_p - n_output)))
        b = jnp.pad(b, (0, n_out_p - n_output))
    w_bf16 = w.astype(jnp.bfloat16)
    b2d = b.astype(jnp.float32).reshape(1, n_out_p)
    return w_bf16, b2d, n_output, block_n


def _choose_block_b(B, n_input, block_n, vmem_cap, *, target=512):
    """Pick an 8-aligned batch tile that evenly tiles a minimally padded batch
    and whose double-buffered VMEM footprint fits the chip budget."""
    target = max(8, min(target, _round_up(B, 8)))
    while True:
        num_b = max(1, _cdiv(B, target))
        block_b = _round_up(_cdiv(B, num_b), 8)
        need = (2 * block_b * n_input * 2      # x tiles, bf16, double-buffered
                + 2 * block_b * block_n * 4    # out tiles, f32, double-buffered
                + 2 * n_input * block_n * 2    # w tiles, bf16, double-buffered
                + 2 * block_n * 4)             # bias tiles, f32
        if need <= vmem_cap or target <= 8:
            return block_b, num_b, need
        target //= 2


def linear_block(x, w_bf16, b2d, n_output, block_n, *, target_block_b=512):
    """x: [B, n_input] f32. w_bf16/b2d/n_output/block_n from prepare_linear_block_params."""
    B, n_input = x.shape
    n_out_p = w_bf16.shape[1]
    num_n = n_out_p // block_n

    vmem_cap = int(_vmem_capacity_bytes() * 0.75)   # leave compiler headroom
    block_b, num_b, need = _choose_block_b(B, n_input, block_n, vmem_cap,
                                           target=target_block_b)
    Bp = num_b * block_b

    x_bf16 = x.astype(jnp.bfloat16)
    if Bp != B:
        x_bf16 = jnp.pad(x_bf16, ((0, Bp - B), (0, 0)))

    vmem_limit = min(max(int(need * 1.3) + (2 << 20), 32 << 20), vmem_cap)

    cost = pl.CostEstimate(
        flops=2 * Bp * n_input * n_out_p,
        transcendentals=0,
        bytes_accessed=(Bp * n_input * 2            # x bf16
                        + n_input * n_out_p * 2     # w bf16
                        + n_out_p * 4               # bias f32
                        + Bp * n_out_p * 4),        # out f32
    )

    out = pl.pallas_call(
        linear_block_kernel,
        out_shape=jax.ShapeDtypeStruct((Bp, n_out_p), jnp.float32),
        grid_spec=pltpu.PrefetchScalarGridSpec(
            num_scalar_prefetch=0,
            grid=(num_b, num_n),
            in_specs=[
                pl.BlockSpec((block_b, n_input), lambda i, j: (i, 0)),
                pl.BlockSpec((n_input, block_n), lambda i, j: (0, j)),
                pl.BlockSpec((1, block_n), lambda i, j: (0, j)),
            ],
            out_specs=pl.BlockSpec((block_b, block_n), lambda i, j: (i, j)),
        ),
        compiler_params=pltpu.CompilerParams(
            dimension_semantics=("parallel", "parallel"),
            vmem_limit_bytes=vmem_limit,
        ),
        cost_estimate=cost,
    )(x_bf16, w_bf16, b2d)

    return out[:B, :n_output]


def reference(x, w, b):
    y = x @ w + b[None, :]
    return jnp.maximum(y, NEG_SLOPE * y)


if __name__ == "__main__":
    key = jax.random.PRNGKey(0)
    kx, kw, kb, kx2 = jax.random.split(key, 4)

    # Small shapes consistent with the module: n_input=32, n_output=64, batch=8.
    B, n_input, n_output = 8, 32, 64

    # Deterministic params mimicking nn.Linear init (uniform +-1/sqrt(fan_in)).
    bound = 1.0 / jnp.sqrt(jnp.float32(n_input))
    w = jax.random.uniform(kw, (n_input, n_output), jnp.float32, -bound, bound)
    b = jax.random.uniform(kb, (n_output,), jnp.float32, -bound, bound)
    x = jax.random.normal(kx, (B, n_input), jnp.float32)

    # One-time parameter prep (pad to lane-dense width + bf16 cast).
    w_p, b_p, n_out, block_n = prepare_linear_block_params(w, b)

    out = jax.block_until_ready(linear_block(x, w_p, b_p, n_out, block_n))
    ref = reference(x, w, b)
    assert out.shape == (B, n_output)
    # bf16 inputs + f32 accumulation: allow bf16-level mismatch vs f32 reference.
    assert jnp.allclose(out, ref, atol=2e-2, rtol=2e-2), "mismatch vs reference"

    # Second check: ragged batch (B not a multiple of 8 / of the tile).
    B2 = 20
    x2 = jax.random.normal(kx2, (B2, n_input), jnp.float32)
    out2 = jax.block_until_ready(linear_block(x2, w_p, b_p, n_out, block_n))
    ref2 = reference(x2, w, b)
    assert out2.shape == (B2, n_output)
    assert jnp.allclose(out2, ref2, atol=2e-2, rtol=2e-2), "mismatch vs reference (ragged batch)"

    print("KERNEL_OK")
</pallas_src>

<mosaic_0001>
module attributes {stable_mosaic.version = 11 : i64} {
  func.func @linear_block_kernel(%arg0: i32, %arg1: i32, %arg2: memref<8x32xbf16, #tpu.memory_space<vmem>>, %arg3: memref<32x128xbf16, #tpu.memory_space<vmem>>, %arg4: memref<1x128xf32, #tpu.memory_space<vmem>>, %arg5: memref<8x128xf32, #tpu.memory_space<vmem>>) attributes {dimension_semantics = [#tpu.dimension_semantics<parallel>, #tpu.dimension_semantics<parallel>], iteration_bounds = array<i64: 1, 1>, scalar_prefetch = 0 : i64, scratch_operands = 0 : i64, tpu.core_type = #tpu.core_type<tc>, window_params = [{transform_indices = @transform_0, window_bounds = array<i64: 8, 32>}, {transform_indices = @transform_1, window_bounds = array<i64: 32, 128>}, {transform_indices = @transform_2, window_bounds = array<i64: 1, 128>}, {transform_indices = @transform_3, window_bounds = array<i64: 8, 128>}]} {
    %c0 = arith.constant 0 : index
    %c0_0 = arith.constant 0 : index
    %0 = vector.load %arg2[%c0, %c0_0] : memref<8x32xbf16, #tpu.memory_space<vmem>>, vector<8x32xbf16>
    %c0_1 = arith.constant 0 : index
    %c0_2 = arith.constant 0 : index
    %1 = vector.load %arg3[%c0_1, %c0_2] : memref<32x128xbf16, #tpu.memory_space<vmem>>, vector<32x128xbf16>
    %cst = arith.constant dense<0.000000e+00> : vector<8x128xf32>
    %2 = tpu.matmul %0, %1, %cst {dimension_numbers = #tpu.dot_dimension_numbers<[1], [0], [0], [1], [0, 0, 1, 1], [], []>} : vector<8x32xbf16>, vector<32x128xbf16>, vector<8x128xf32> -> vector<8x128xf32>
    %c0_3 = arith.constant 0 : index
    %c0_4 = arith.constant 0 : index
    %3 = vector.load %arg4[%c0_3, %c0_4] : memref<1x128xf32, #tpu.memory_space<vmem>>, vector<1x128xf32>
    %4 = vector.broadcast %3 : vector<1x128xf32> to vector<8x128xf32>
    %5 = arith.addf %2, %4 : vector<8x128xf32>
    %cst_5 = arith.constant 0.00999999977 : f32
    %6 = vector.broadcast %cst_5 : f32 to vector<8x128xf32>
    %7 = arith.mulf %6, %5 : vector<8x128xf32>
    %8 = arith.maximumf %5, %7 : vector<8x128xf32>
    %c0_6 = arith.constant 0 : index
    %c0_7 = arith.constant 0 : index
    %9 = vector.load %arg5[%c0_6, %c0_7] : memref<8x128xf32, #tpu.memory_space<vmem>>, vector<8x128xf32>
    tpu.vector_store %arg5[%c0_6, %c0_7], %8 {strides = array<i32>} : memref<8x128xf32, #tpu.memory_space<vmem>>, vector<8x128xf32>,
    return
  }
  func.func @transform_0(%arg0: i32, %arg1: i32) -> (i32, i32) {
    %c0_i32 = arith.constant 0 : i32
    %c0_i32_0 = arith.constant 0 : i32
    return %arg0, %c0_i32 : i32, i32
  }
  func.func @transform_1(%arg0: i32, %arg1: i32) -> (i32, i32) {
    %c0_i32 = arith.constant 0 : i32
    %c0_i32_0 = arith.constant 0 : i32
    return %c0_i32, %arg1 : i32, i32
  }
  func.func @transform_2(%arg0: i32, %arg1: i32) -> (i32, i32) {
    %c0_i32 = arith.constant 0 : i32
    %c0_i32_0 = arith.constant 0 : i32
    return %c0_i32, %arg1 : i32, i32
  }
  func.func @transform_3(%arg0: i32, %arg1: i32) -> (i32, i32) {
    %c0_i32 = arith.constant 0 : i32
    return %arg0, %arg1 : i32, i32
  }
}

</mosaic_0001>

<bundles_post_ra>
// kernel: tpu_custom_call.1
= control target key start
LH: loop header
LB: loop body
LE: loop exit
PB: predicated region body
PF: predicated region fallthrough
CT: control target
= control target key end

     0   :  { %8 = vsyncpa [#allocation3], 0  ;;  %s258_s0 = inlined_call_operand.hbm [shape: bf16[8,32], index: 0, kind: input, shape index: {}]   ;;  %s259_s1 = inlined_call_operand.hbm [shape: bf16[32,128], index: 1, kind: input, shape index: {}]   ;;  %s260_s2 = inlined_call_operand.vmem [shape: f32[1,128], index: 2, kind: input, shape index: {}]   ;;  %s261_s3 = inlined_call_operand.hbm [shape: f32[8,128], index: 3, kind: output, shape index: {}]  }
   0x1   :  { %9 = vsyncpa [#allocation6], 0 }
   0x2   :  { %10 = vsyncpa [#allocation4], 0  ;;  %s219_s12 = smov [#allocation2]   ;;  %s220_s14 = smov [#allocation5]  }
   0x3   :  { %s17_s13 = sshll.u32 %s219_s12, 4  ;;  %s26_s15 = sshll.u32 %s220_s14, 4  ;;  %s18_s13 = int_to_ptr.vmem [resolvable:$true] %s17_s13  ;;  %s27_s15 = int_to_ptr.vmem [resolvable:$true] %s26_s15 }
   0x4   :  { %s161_s16 = scalar_lea.vmem %s18_s13, 64  ;;  %p166_p1 = scmp.lt.s32.totalorder %s18_s13, %s18_s13 }
   0x5   :  { %p162_p0 = scmp.ne.s32.totalorder %s18_s13, %s161_s16  ;;  %p167_p2 = scmp.lt.s32.totalorder %s161_s16, %s161_s16 }
   0x7   :  { %p168_p3 = por %p167_p2, %p166_p1 }
   0x9   :  { %p169_p4 = pnand %p168_p3, %p162_p0 }
   0xb   :  { %172 = shalt.err (!%p169_p4)
}
   0xc   :  { %20 = dma.hbm_to_vmem [thread:$0]  %s258_s0, 64, %s18_s13, [#allocation3]  }
   0xd   :  { %s181_s19 = scalar_lea.vmem %s27_s15, 256  ;;  %p186_p6 = scmp.lt.s32.totalorder %s27_s15, %s27_s15 }
   0xe   :  { %p182_p5 = scmp.ne.s32.totalorder %s27_s15, %s181_s19  ;;  %p187_p7 = scmp.lt.s32.totalorder %s181_s19, %s181_s19 }
  0x10   :  { %p188_p8 = por %p187_p7, %p186_p6 }
  0x12   :  { %p189_p9 = pnand %p188_p8, %p182_p5 }
  0x14   :  { %192 = shalt.err (!%p189_p9)
}
  0x15   :  { %s221_s20 = smov 64   ;;  %s222_s21 = smov 4  }
  0x16   :  { %32 = dma.hbm_to_vmem [thread:$0]  %s259_s1, 256, %s27_s15, [#allocation6], %s221_s20, %s221_s20, %s222_s21  }
  0x17   :  { %213 = dma.done.wait [#allocation3], 64  }
  0x18   :  { %214 = vsyncadd [#allocation3], 4294967232 }
  0x19   :  { %215 = dma.done.wait [#allocation6], 256  }
  0x1a   :  { %216 = vsyncadd [#allocation6], 4294967040  ;;  %v223_v0 = vmov 0.0   ;;  %vm224_vm0 = vmmov 0   ;;  %v151_v1 = vld [vmem:[#allocation5 + $0x8] sm:$0xff]   ;;  %v152_v2 = vld [vmem:[#allocation5] sm:$0xff]  }
  0x1b   :  { %136 = vmatprep.subr.bf16.mxu0 %v223_v0  ;;  %140 = vmatprep.mubr.msk.bf16.mxu0 %vm224_vm0, %v223_v0  ;;  %v42_v3 = vld [vmem:[#allocation2] sm:$0xf]  ;;  %vm66_vm1 = vcmask 261120   ;;  %s225_s1 = smov [#allocation7]  }
  0x1c   :  { %137 = vmatpush3.bf16.msra.mxu0 %v151_v1  ;;  %v129_v4 = vld [vmem:[%s260_s2] ss:$0 sm:$0xff]  ;;  %s119_s25 = sshll.u32 %s225_s1, 4  ;;  %s120_s25 = int_to_ptr.vmem [resolvable:$true] %s119_s25 }
  0x1d   :  { %138 = vmatprep.subr.bf16.mxu0 %v223_v0  ;;  %s193_s26 = scalar_lea.vmem %s120_s25, 128  ;;  %p198_p11 = scmp.lt.s32.totalorder %s120_s25, %s120_s25 }
  0x1e   :  { %p194_p10 = scmp.ne.s32.totalorder %s120_s25, %s193_s26  ;;  %p199_p12 = scmp.lt.s32.totalorder %s193_s26, %s193_s26 }
  0x20   :  { %139 = vmatpush3.bf16.msra.mxu0 %v152_v2  ;;  %p200_p13 = por %p199_p12, %p198_p11 }
  0x22   :  { %p201_p0 = pnand %p200_p13, %p194_p10 }
  0x23   :  { %141 = vmatmul.mubr.msk.bf16.vlgmr.msra.gmra.mxu0 %vm66_vm1, %v42_v3 }
  0xe3   :  { %v104_v5 = vpop.f32.mrf.mxu0 }
  0xe4   :  { %v105_v6 = vadd.f32 %v129_v4, %v104_v5 }
  0xe5   :  { %v142_v7 = vpop.f32.mrf.mxu0 }
  0xe6   :  { %v110_v8 = vmul.f32 0.01, %v105_v6 }
  0xe7   :  { %v107_v9 = vpop.f32.mrf.mxu0 }
  0xe8   :  { %v111_v10 = vmax.f32 %v105_v6, %v110_v8 }
  0xe9   :  { %v143_v11 = vpop.f32.mrf.mxu0 }
  0xea   :  { %112 = vst [vmem:[#allocation7] sm:$0xff] %v111_v10 }
  0xeb   :  { %204 = shalt.err (!%p201_p0)
}
  0xec   :  { %122 = dma.vmem_to_hbm [thread:$0]  %s120_s25, 128, %s261_s3, [#allocation4]  }
  0xed   :  { %217 = dma.done.wait [#allocation4], 128  }
  0xee   :  { %218 = vsyncadd [#allocation4], 4294967168 }
  0xef   :  { %126 = vsyncpa [#allocation3], 1 }
  0xf0   :  { %127 = vsyncpa [#allocation6], 1 }
  0xf1   :  { %128 = vsyncpa [#allocation4], 1 }

</bundles_post_ra>
